<compile_context>
chip_gen: v5e
topology: v5e:2x2
jax: 0.10.0
libtpu: 0.0.40
codegen_flags: <defaults>
</compile_context>

<pallas_src>
import jax
import jax.numpy as jnp
from jax.experimental import pallas as pl
from jax.experimental.pallas import tpu as pltpu

# Padded dimensions (lane-aligned).
INP = 8       # input features 6 -> 8   (sublane-friendly)
H12P = 256    # fc1|fc2 output 200 -> 256
H34P = 128    # fc3∘fc4 output 50 -> 128
OUTP = 128    # fc5 output 32 -> 128

F_IN = 6
F_OUT = 32


def _round_up(n, m):
    return ((n + m - 1) // m) * m


def se3net_kernel(x_ref, w12_ref, w34_ref, w5_ref, b_ref, o_ref):
    x = x_ref[...]                      # (TB, 8) f32

    b12 = b_ref[0:1, :]                 # (1, 256)
    b34 = b_ref[1:2, 0:H34P]            # (1, 128)
    b5 = b_ref[2:3, 0:OUTP]             # (1, 128)

    # fused fc1|fc2 + ReLU
    h12 = jnp.dot(x, w12_ref[...], preferred_element_type=jnp.float32) + b12
    h12 = jnp.maximum(h12, 0.0)         # (TB, 256)

    # composed fc3∘fc4 + ReLU
    h34 = jnp.dot(h12, w34_ref[...], preferred_element_type=jnp.float32) + b34
    h34 = jnp.maximum(h34, 0.0)         # (TB, 128)

    # fc5 (no activation), lane-dense padded store
    o_ref[...] = (jnp.dot(h34, w5_ref[...], preferred_element_type=jnp.float32)
                  + b5)


def se3net_forward(x, packed_params, *, tb=None):
    """x: (B, 6) any float dtype. Returns (B, 32) float32."""
    w12p, w34p, w5p, b_packed = packed_params
    x = x.astype(jnp.float32)
    B = x.shape[0]

    if tb is None:
        tb = min(512, _round_up(B, 8))   # fits all VMEM budgets incl. v7x
    Bp = _round_up(B, tb)

    # Pad batch to a multiple of tb and features 6 -> 8 (zeros; exact).
    xp = jnp.zeros((Bp, INP), jnp.float32).at[:B, :F_IN].set(x)

    grid = (Bp // tb,)
    out = pl.pallas_call(
        se3net_kernel,
        out_shape=jax.ShapeDtypeStruct((Bp, OUTP), jnp.float32),
        grid_spec=pltpu.PrefetchScalarGridSpec(
            num_scalar_prefetch=0,
            grid=grid,
            in_specs=[
                pl.BlockSpec((tb, INP), lambda i: (i, 0)),      # x tile
                pl.BlockSpec((INP, H12P), lambda i: (0, 0)),    # W12 (resident)
                pl.BlockSpec((H12P, H34P), lambda i: (0, 0)),   # W34 (resident)
                pl.BlockSpec((H34P, OUTP), lambda i: (0, 0)),   # W5  (resident)
                pl.BlockSpec((3, H12P), lambda i: (0, 0)),      # biases
            ],
            out_specs=pl.BlockSpec((tb, OUTP), lambda i: (i, 0)),
        ),
        compiler_params=pltpu.CompilerParams(
            dimension_semantics=("parallel",),
        ),
    )(xp, w12p, w34p, w5p, b_packed)

    return out[:B, :F_OUT]


# ----------------------------------------------------------------------------
# Parameter construction (nn.Linear-style init) and packing.
# ----------------------------------------------------------------------------

def init_linear(key, in_f, out_f):
    """Deterministic init mimicking nn.Linear defaults (uniform +/- 1/sqrt(in))."""
    kw, kb = jax.random.split(key)
    bound = 1.0 / (in_f ** 0.5)
    w = jax.random.uniform(kw, (in_f, out_f), jnp.float32, -bound, bound)
    b = jax.random.uniform(kb, (1, out_f), jnp.float32, -bound, bound)
    return w, b


def make_raw_params(key):
    keys = jax.random.split(key, 5)
    w1, b1 = init_linear(keys[0], 6, 100)
    w2, b2 = init_linear(keys[1], 6, 100)
    w3, b3 = init_linear(keys[2], 200, 100)
    w4, b4 = init_linear(keys[3], 100, 50)
    w5, b5 = init_linear(keys[4], 50, 32)
    return (w1, b1, w2, b2, w3, b3, w4, b4, w5, b5)


def pack_params(raw_params):
    (w1, b1, w2, b2, w3, b3, w4, b4, w5, b5) = raw_params

    # 1) fuse fc1 | fc2
    w12 = jnp.concatenate([w1, w2], axis=1)          # (6, 200)
    b12 = jnp.concatenate([b1, b2], axis=1)          # (1, 200)

    # 2) compose fc3 ∘ fc4 (fc3 has no activation)
    w34 = w3 @ w4                                    # (200, 50)
    b34 = b3 @ w4 + b4                               # (1, 50)

    # 3) zero-pad to lane-aligned shapes (exact by construction)
    w12p = jnp.zeros((INP, H12P), jnp.float32).at[:F_IN, :200].set(w12)
    w34p = jnp.zeros((H12P, H34P), jnp.float32).at[:200, :50].set(w34)
    w5p = jnp.zeros((H34P, OUTP), jnp.float32).at[:50, :F_OUT].set(w5)

    # 4) pack biases into one small buffer
    b_packed = jnp.zeros((3, H12P), jnp.float32)
    b_packed = b_packed.at[0, :200].set(b12[0])
    b_packed = b_packed.at[1, :50].set(b34[0])
    b_packed = b_packed.at[2, :F_OUT].set(b5[0])

    return (w12p, w34p, w5p, b_packed)


def reference_forward(x, raw_params):
    """Unfused pure-JAX reference matching the PyTorch module exactly."""
    (w1, b1, w2, b2, w3, b3, w4, b4, w5, b5) = raw_params
    x = x.astype(jnp.float32)
    x1 = jax.nn.relu(x @ w1 + b1)
    x2 = jax.nn.relu(x @ w2 + b2)
    x3 = jnp.concatenate([x1, x2], axis=1)
    h = x3 @ w3 + b3
    h = jax.nn.relu(h @ w4 + b4)
    return h @ w5 + b5


if __name__ == "__main__":
    key = jax.random.PRNGKey(0)
    kx, kp = jax.random.split(key)

    B = 8
    x = jax.random.normal(kx, (B, F_IN), dtype=jnp.float32)

    raw_params = make_raw_params(kp)
    packed_params = pack_params(raw_params)

    y = se3net_forward(x, packed_params)
    y = jax.block_until_ready(y)

    y_ref = reference_forward(x, raw_params)
    assert y.shape == (B, F_OUT)
    assert jnp.allclose(y, y_ref, atol=1e-4, rtol=1e-4), "mismatch vs JAX reference"

    print("KERNEL_OK")
</pallas_src>

<mosaic_0001>
module attributes {stable_mosaic.version = 11 : i64} {
  func.func @se3net_kernel(%arg0: i32, %arg1: memref<8x8xf32, #tpu.memory_space<vmem>>, %arg2: memref<8x256xf32, #tpu.memory_space<vmem>>, %arg3: memref<256x128xf32, #tpu.memory_space<vmem>>, %arg4: memref<128x128xf32, #tpu.memory_space<vmem>>, %arg5: memref<3x256xf32, #tpu.memory_space<vmem>>, %arg6: memref<8x128xf32, #tpu.memory_space<vmem>>) attributes {dimension_semantics = [#tpu.dimension_semantics<parallel>], iteration_bounds = array<i64: 1>, scalar_prefetch = 0 : i64, scratch_operands = 0 : i64, tpu.core_type = #tpu.core_type<tc>, window_params = [{transform_indices = @transform_0, window_bounds = array<i64: 8, 8>}, {pipeline_mode = #tpu.pipeline_mode<synchronous>, transform_indices = @transform_1, window_bounds = array<i64: 8, 256>}, {pipeline_mode = #tpu.pipeline_mode<synchronous>, transform_indices = @transform_2, window_bounds = array<i64: 256, 128>}, {pipeline_mode = #tpu.pipeline_mode<synchronous>, transform_indices = @transform_3, window_bounds = array<i64: 128, 128>}, {pipeline_mode = #tpu.pipeline_mode<synchronous>, transform_indices = @transform_4, window_bounds = array<i64: 3, 256>}, {transform_indices = @transform_5, window_bounds = array<i64: 8, 128>}]} {
    %c0 = arith.constant 0 : index
    %c0_0 = arith.constant 0 : index
    %0 = vector.load %arg1[%c0, %c0_0] : memref<8x8xf32, #tpu.memory_space<vmem>>, vector<8x8xf32>
    %c0_1 = arith.constant 0 : index
    %c0_2 = arith.constant 0 : index
    %1 = vector.load %arg5[%c0_1, %c0_2] : memref<3x256xf32, #tpu.memory_space<vmem>>, vector<1x256xf32>
    %c1 = arith.constant 1 : index
    %c0_3 = arith.constant 0 : index
    %2 = vector.load %arg5[%c1, %c0_3] : memref<3x256xf32, #tpu.memory_space<vmem>>, vector<1x128xf32>
    %c2 = arith.constant 2 : index
    %c0_4 = arith.constant 0 : index
    %3 = vector.load %arg5[%c2, %c0_4] : memref<3x256xf32, #tpu.memory_space<vmem>>, vector<1x128xf32>
    %c0_5 = arith.constant 0 : index
    %c0_6 = arith.constant 0 : index
    %4 = vector.load %arg2[%c0_5, %c0_6] : memref<8x256xf32, #tpu.memory_space<vmem>>, vector<8x256xf32>
    %cst = arith.constant dense<0.000000e+00> : vector<8x256xf32>
    %5 = tpu.matmul %0, %4, %cst {dimension_numbers = #tpu.dot_dimension_numbers<[1], [0], [0], [1], [0, 0, 1, 1], [], []>} : vector<8x8xf32>, vector<8x256xf32>, vector<8x256xf32> -> vector<8x256xf32>
    %6 = vector.broadcast %1 : vector<1x256xf32> to vector<8x256xf32>
    %7 = arith.addf %5, %6 : vector<8x256xf32>
    %cst_7 = arith.constant 0.000000e+00 : f32
    %8 = vector.broadcast %cst_7 : f32 to vector<8x256xf32>
    %9 = arith.maximumf %7, %8 : vector<8x256xf32>
    %c0_8 = arith.constant 0 : index
    %c0_9 = arith.constant 0 : index
    %10 = vector.load %arg3[%c0_8, %c0_9] : memref<256x128xf32, #tpu.memory_space<vmem>>, vector<256x128xf32>
    %cst_10 = arith.constant dense<0.000000e+00> : vector<8x128xf32>
    %11 = tpu.matmul %9, %10, %cst_10 {dimension_numbers = #tpu.dot_dimension_numbers<[1], [0], [0], [1], [0, 0, 1, 1], [], []>} : vector<8x256xf32>, vector<256x128xf32>, vector<8x128xf32> -> vector<8x128xf32>
    %12 = vector.broadcast %2 : vector<1x128xf32> to vector<8x128xf32>
    %13 = arith.addf %11, %12 : vector<8x128xf32>
    %cst_11 = arith.constant 0.000000e+00 : f32
    %14 = vector.broadcast %cst_11 : f32 to vector<8x128xf32>
    %15 = arith.maximumf %13, %14 : vector<8x128xf32>
    %c0_12 = arith.constant 0 : index
    %c0_13 = arith.constant 0 : index
    %16 = vector.load %arg4[%c0_12, %c0_13] : memref<128x128xf32, #tpu.memory_space<vmem>>, vector<128x128xf32>
    %cst_14 = arith.constant dense<0.000000e+00> : vector<8x128xf32>
    %17 = tpu.matmul %15, %16, %cst_14 {dimension_numbers = #tpu.dot_dimension_numbers<[1], [0], [0], [1], [0, 0, 1, 1], [], []>} : vector<8x128xf32>, vector<128x128xf32>, vector<8x128xf32> -> vector<8x128xf32>
    %18 = vector.broadcast %3 : vector<1x128xf32> to vector<8x128xf32>
    %19 = arith.addf %17, %18 : vector<8x128xf32>
    %c0_15 = arith.constant 0 : index
    %c0_16 = arith.constant 0 : index
    %20 = vector.load %arg6[%c0_15, %c0_16] : memref<8x128xf32, #tpu.memory_space<vmem>>, vector<8x128xf32>
    tpu.vector_store %arg6[%c0_15, %c0_16], %19 {strides = array<i32>} : memref<8x128xf32, #tpu.memory_space<vmem>>, vector<8x128xf32>,
    return
  }
  func.func @transform_0(%arg0: i32) -> (i32, i32) {
    %c0_i32 = arith.constant 0 : i32
    %c0_i32_0 = arith.constant 0 : i32
    return %arg0, %c0_i32 : i32, i32
  }
  func.func @transform_1(%arg0: i32) -> (i32, i32) {
    %c0_i32 = arith.constant 0 : i32
    %c0_i32_0 = arith.constant 0 : i32
    %c0_i32_1 = arith.constant 0 : i32
    return %c0_i32, %c0_i32_0 : i32, i32
  }
  func.func @transform_2(%arg0: i32) -> (i32, i32) {
    %c0_i32 = arith.constant 0 : i32
    %c0_i32_0 = arith.constant 0 : i32
    %c0_i32_1 = arith.constant 0 : i32
    return %c0_i32, %c0_i32_0 : i32, i32
  }
  func.func @transform_3(%arg0: i32) -> (i32, i32) {
    %c0_i32 = arith.constant 0 : i32
    %c0_i32_0 = arith.constant 0 : i32
    %c0_i32_1 = arith.constant 0 : i32
    return %c0_i32, %c0_i32_0 : i32, i32
  }
  func.func @transform_4(%arg0: i32) -> (i32, i32) {
    %c0_i32 = arith.constant 0 : i32
    %c0_i32_0 = arith.constant 0 : i32
    %c0_i32_1 = arith.constant 0 : i32
    return %c0_i32, %c0_i32_0 : i32, i32
  }
  func.func @transform_5(%arg0: i32) -> (i32, i32) {
    %c0_i32 = arith.constant 0 : i32
    %c0_i32_0 = arith.constant 0 : i32
    return %arg0, %c0_i32 : i32, i32
  }
}

</mosaic_0001>

<bundles_post_ra>
// kernel: tpu_custom_call.1
= control target key start
LH: loop header
LB: loop body
LE: loop exit
PB: predicated region body
PF: predicated region fallthrough
CT: control target
= control target key end

     0   :  { %10 = vsyncpa [#allocation3], 0  ;;  %s503_s0 = inlined_call_operand.hbm [shape: f32[8,8], index: 0, kind: input, shape index: {}]   ;;  %s504_s1 = inlined_call_operand.hbm [shape: f32[8,256], index: 1, kind: input, shape index: {}]   ;;  %s505_s2 = inlined_call_operand.hbm [shape: f32[256,128], index: 2, kind: input, shape index: {}]   ;;  %s506_s3 = inlined_call_operand.hbm [shape: f32[128,128], index: 3, kind: input, shape index: {}]   ;;  %s507_s4 = inlined_call_operand.hbm [shape: f32[3,256], index: 4, kind: input, shape index: {}]   ;;  %s508_s5 = inlined_call_operand.hbm [shape: f32[8,128], index: 5, kind: output, shape index: {}]  }
   0x1   :  { %11 = vsyncpa [#allocation6], 0 }
   0x2   :  { %12 = vsyncpa [#allocation9], 0  ;;  %s30_s20 = sshll.u32 %s504_s1, 4  ;;  %s31_s20 = int_to_ptr.hbm [resolvable:$true] %s30_s20 }
   0x3   :  { %13 = vsyncpa [#allocation4], 0  ;;  %s445_s21 = smov [#allocation5]   ;;  %s53_s25 = sshll.u32 %s506_s3, 4  ;;  %s54_s25 = int_to_ptr.hbm [resolvable:$true] %s53_s25 }
   0x4   :  { %s32_s22 = sshll.u32 %s445_s21, 4  ;;  %s446_s26 = smov [#allocation8]   ;;  %s33_s22 = int_to_ptr.vmem [resolvable:$true] %s32_s22 }
   0x5   :  { %35 = dma.hbm_to_vmem [thread:$0]  %s31_s20, 256, %s33_s22, [#allocation6]  }
   0x6   :  { %s55_s27 = sshll.u32 %s446_s26, 4  ;;  %s19_s30 = sshll.u32 %s503_s0, 4  ;;  %s56_s27 = int_to_ptr.vmem [resolvable:$true] %s55_s27  ;;  %s20_s30 = int_to_ptr.hbm [resolvable:$true] %s19_s30 }
   0x7   :  { %s447_s1 = smov 128   ;;  %s448_s6 = smov 8  }
   0x8   :  { %61 = dma.hbm_to_vmem [thread:$0]  %s54_s25, 2048, %s56_s27, [#allocation9], %s447_s1, %s447_s1, %s448_s6  }
   0x9   :  { %s40_s9 = sshll.u32 %s505_s2, 4  ;;  %s449_s10 = smov [#allocation2]   ;;  %s41_s9 = int_to_ptr.hbm [resolvable:$true] %s40_s9 }
   0xa   :  { %s21_s11 = sshll.u32 %s449_s10, 4  ;;  %s450_s3 = smov [#allocation7]   ;;  %s22_s11 = int_to_ptr.vmem [resolvable:$true] %s21_s11 }
   0xb   :  { %24 = dma.hbm_to_vmem [thread:$0]  %s20_s30, 128, %s22_s11, [#allocation3]  }
   0xc   :  { %s42_s12 = sshll.u32 %s450_s3, 4  ;;  %s67_s0 = sshll.u32 %s507_s4, 4  ;;  %s43_s12 = int_to_ptr.vmem [resolvable:$true] %s42_s12  ;;  %s68_s0 = int_to_ptr.hbm [resolvable:$true] %s67_s0 }
   0xd   :  { %48 = dma.hbm_to_vmem [thread:$0]  %s41_s9, 4096, %s43_s12, [#allocation6], %s447_s1, %s447_s1, %s448_s6  }
   0xe   :  { %s451_s15 = smov [#allocation10]  }
   0xf   :  { %s69_s16 = sshll.u32 %s451_s15, 4  ;;  %s70_s16 = int_to_ptr.vmem [resolvable:$true] %s69_s16 }
  0x10   :  { %72 = dma.hbm_to_vmem [thread:$0]  %s68_s0, 128, %s70_s16, [#allocation9]  }
  0x11   :  { %437 = dma.done.wait [#allocation3], 128  }
  0x12   :  { %438 = vsyncadd [#allocation3], 4294967168 }
  0x13   :  { %439 = dma.done.wait [#allocation6], 4352  }
  0x14   :  { %440 = vsyncadd [#allocation6], 4294962944 }
  0x15   :  { %441 = dma.done.wait [#allocation9], 2176  }
  0x16   :  { %442 = vsyncadd [#allocation9], 4294965120  ;;  %vm104_vm0 = vcmask 64512   ;;  %v97_v0 = vld [vmem:[#allocation5] sm:$0xff]  ;;  %v93_v1 = vld [vmem:[#allocation2] sm:$0xff]  ;;  %s452_s2 = smov [#allocation11]  }
  0x17   :  { %v98_v2 = vld [vmem:[#allocation5 + $0x8] sm:$0xff]  ;;  %123 = vmatpush.msra.mxu1 %v97_v0  ;;  %v164_v4 = vld [vmem:[#allocation7 + $0x70] sm:$0xff]  ;;  %v163_v6 = vld [vmem:[#allocation7 + $0x68] sm:$0xff]  ;;  %s267_s4 = sshll.u32 %s452_s2, 4  ;;  %s269_s19 = sshll.u32 %s508_s5, 4  ;;  %s268_s4 = int_to_ptr.vmem [resolvable:$true] %s267_s4  ;;  %s270_s19 = int_to_ptr.hbm [resolvable:$true] %s269_s19 }
  0x18   :  { %v165_v3 = vld [vmem:[#allocation7 + $0x78] sm:$0xff]  ;;  %281 = vmatmul.msk.f32.vlgmr.msra.gmra.mxu1 %vm104_vm0, %v93_v1  ;;  %v180_v7 = vld [vmem:[#allocation7 + $0xf0] sm:$0xff]  ;;  %v179_v8 = vld [vmem:[#allocation7 + $0xe8] sm:$0xff] }
  0x19   :  { %183 = vmatpush.msra.mxu2 %v165_v3  ;;  %v181_v5 = vld [vmem:[#allocation7 + $0xf8] sm:$0xff]  ;;  %143 = vmatpush.msrb.mxu1 %v98_v2  ;;  %v162_v9 = vld [vmem:[#allocation7 + $0x60] sm:$0xff]  ;;  %v160_v13 = vld [vmem:[#allocation7 + $0x50] sm:$0xff] }
  0x1a   :  { %203 = vmatpush.msra.mxu3 %v181_v5  ;;  %v178_v10 = vld [vmem:[#allocation7 + $0xe0] sm:$0xff]  ;;  %v161_v11 = vld [vmem:[#allocation7 + $0x58] sm:$0xff]  ;;  %v176_v14 = vld [vmem:[#allocation7 + $0xd0] sm:$0xff] }
  0x1b   :  { %184 = vmatpush.msra.mxu2 %v164_v4  ;;  %v177_v12 = vld [vmem:[#allocation7 + $0xd8] sm:$0xff]  ;;  %v159_v15 = vld [vmem:[#allocation7 + $0x48] sm:$0xff]  ;;  %v158_v17 = vld [vmem:[#allocation7 + $0x40] sm:$0xff] }
  0x1c   :  { %204 = vmatpush.msra.mxu3 %v180_v7  ;;  %v175_v16 = vld [vmem:[#allocation7 + $0xc8] sm:$0xff]  ;;  %v174_v18 = vld [vmem:[#allocation7 + $0xc0] sm:$0xff]  ;;  %v157_v19 = vld [vmem:[#allocation7 + $0x38] sm:$0xff] }
  0x1d   :  { %185 = vmatpush.msra.mxu2 %v163_v6  ;;  %v173_v20 = vld [vmem:[#allocation7 + $0xb8] sm:$0xff]  ;;  %v156_v21 = vld [vmem:[#allocation7 + $0x30] sm:$0xff]  ;;  %v155_v22 = vld [vmem:[#allocation7 + $0x28] sm:$0xff] }
  0x1e   :  { %205 = vmatpush.msra.mxu3 %v179_v8  ;;  %v154_v23 = vld [vmem:[#allocation7 + $0x20] sm:$0xff]  ;;  %v153_v24 = vld [vmem:[#allocation7 + $0x18] sm:$0xff]  ;;  %v152_v25 = vld [vmem:[#allocation7 + $0x10] sm:$0xff] }
  0x1f   :  { %186 = vmatpush.msra.mxu2 %v162_v9  ;;  %v172_v26 = vld [vmem:[#allocation7 + $0xb0] sm:$0xff]  ;;  %v151_v27 = vld [vmem:[#allocation7 + $0x8] sm:$0xff]  ;;  %v150_v29 = vld [vmem:[#allocation7] sm:$0xff] }
  0x20   :  { %206 = vmatpush.msra.mxu3 %v178_v10  ;;  %282 = vmatmul.msk.f32.vlgmr.msrb.gmra.mxu1 %vm104_vm0, %v93_v1  ;;  %v171_v28 = vld [vmem:[#allocation7 + $0xa8] sm:$0xff]  ;;  %v170_v30 = vld [vmem:[#allocation7 + $0xa0] sm:$0xff]  ;;  %v169_v31 = vld [vmem:[#allocation7 + $0x98] sm:$0xff] }
  0x21   :  { %187 = vmatpush.msra.mxu2 %v161_v11  ;;  %v168_v32 = vld [vmem:[#allocation7 + $0x90] sm:$0xff]  ;;  %v167_v33 = vld [vmem:[#allocation7 + $0x88] sm:$0xff]  ;;  %v166_v34 = vld [vmem:[#allocation7 + $0x80] sm:$0xff] }
  0x22   :  { %207 = vmatpush.msra.mxu3 %v177_v12  ;;  %v239_v35 = vld [vmem:[#allocation8 + $0x78] sm:$0xff]  ;;  %v238_v36 = vld [vmem:[#allocation8 + $0x70] sm:$0xff]  ;;  %v237_v37 = vld [vmem:[#allocation8 + $0x68] sm:$0xff] }
  0x23   :  { %188 = vmatpush.msra.mxu2 %v160_v13  ;;  %241 = vmatpush.msra.mxu0 %v239_v35  ;;  %v236_v38 = vld [vmem:[#allocation8 + $0x60] sm:$0xff]  ;;  %v235_v39 = vld [vmem:[#allocation8 + $0x58] sm:$0xff]  ;;  %v234_v40 = vld [vmem:[#allocation8 + $0x50] sm:$0xff] }
  0x24   :  { %208 = vmatpush.msra.mxu3 %v176_v14  ;;  %v233_v41 = vld [vmem:[#allocation8 + $0x48] sm:$0xff]  ;;  %v232_v42 = vld [vmem:[#allocation8 + $0x40] sm:$0xff]  ;;  %v231_v44 = vld [vmem:[#allocation8 + $0x38] sm:$0xff] }
  0x25   :  { %189 = vmatpush.msra.mxu2 %v159_v15  ;;  %242 = vmatpush.msra.mxu0 %v238_v36  ;;  %v94_v43 = vld [vmem:[#allocation10] ss:$4 sm:$0x3]  ;;  %v230_v53 = vld [vmem:[#allocation8 + $0x30] sm:$0xff]  ;;  %v229_v54 = vld [vmem:[#allocation8 + $0x28] sm:$0xff] }
  0x26   :  { %209 = vmatpush.msra.mxu3 %v175_v16  ;;  %v100_v45 = vperm.slane %v94_v43, 0  ;;  %v101_v49 = vperm.slane %v94_v43, 1  ;;  %v228_v55 = vld [vmem:[#allocation8 + $0x20] sm:$0xff]  ;;  %v227_v56 = vld [vmem:[#allocation8 + $0x18] sm:$0xff]  ;;  %v226_v57 = vld [vmem:[#allocation8 + $0x10] sm:$0xff] }
  0x27   :  { %190 = vmatpush.msra.mxu2 %v158_v17  ;;  %243 = vmatpush.msra.mxu0 %v237_v37  ;;  %v225_v58 = vld [vmem:[#allocation8 + $0x8] sm:$0xff]  ;;  %v224_v59 = vld [vmem:[#allocation8] sm:$0xff] }
  0x28   :  { %210 = vmatpush.msra.mxu3 %v174_v18  ;;  %v291_v60 = vld [vmem:[#allocation10 + $0x1] ss:$0 sm:$0xff]  ;;  %v292_v2 = vld [vmem:[#allocation10 + $0x2] ss:$0 sm:$0xff] }
  0x29   :  { %191 = vmatpush.msra.mxu2 %v157_v19  ;;  %244 = vmatpush.msra.mxu0 %v236_v38 }
  0x2a   :  { %211 = vmatpush.msra.mxu3 %v173_v20 }
  0x2b   :  { %192 = vmatpush.msra.mxu2 %v156_v21  ;;  %245 = vmatpush.msra.mxu0 %v235_v39 }
  0x2c   :  { %212 = vmatpush.msra.mxu3 %v172_v26 }
  0x2d   :  { %193 = vmatpush.msra.mxu2 %v155_v22  ;;  %246 = vmatpush.msra.mxu0 %v234_v40 }
  0x2e   :  { %213 = vmatpush.msra.mxu3 %v171_v28 }
  0x2f   :  { %194 = vmatpush.msra.mxu2 %v154_v23  ;;  %247 = vmatpush.msra.mxu0 %v233_v41 }
  0x30   :  { %214 = vmatpush.msra.mxu3 %v170_v30 }
  0x31   :  { %195 = vmatpush.msra.mxu2 %v153_v24  ;;  %248 = vmatpush.msra.mxu0 %v232_v42 }
  0x32   :  { %215 = vmatpush.msra.mxu3 %v169_v31 }
  0x33   :  { %196 = vmatpush.msra.mxu2 %v152_v25  ;;  %249 = vmatpush.msra.mxu0 %v231_v44 }
  0x34   :  { %216 = vmatpush.msra.mxu3 %v168_v32 }
  0x35   :  { %197 = vmatpush.msra.mxu2 %v151_v27  ;;  %250 = vmatpush.msra.mxu0 %v230_v53 }
  0x36   :  { %217 = vmatpush.msra.mxu3 %v167_v33 }
  0x37   :  { %198 = vmatpush.msra.mxu2 %v150_v29  ;;  %251 = vmatpush.msra.mxu0 %v229_v54 }
  0x38   :  { %218 = vmatpush.msra.mxu3 %v166_v34 }
  0x39   :  { %252 = vmatpush.msra.mxu0 %v228_v55 }
  0x3b   :  { %253 = vmatpush.msra.mxu0 %v227_v56 }
  0x3d   :  { %254 = vmatpush.msra.mxu0 %v226_v57 }
  0x3f   :  { %255 = vmatpush.msra.mxu0 %v225_v58 }
  0x41   :  { %256 = vmatpush.msra.mxu0 %v224_v59 }
  0x95   :  { %v125_v46 = vpop.f32.mrf.mxu1 }
  0x96   :  { %v126_v47 = vadd.f32 %v125_v46, %v100_v45 }
  0x98   :  { %v148_v48 = vmax.f32 %v126_v47, 0.0 }
  0x9a   :  { %199 = vmatmul.f32.vlgmr.msra.gmra.mxu2 %v148_v48 }
  0x9d   :  { %v145_v50 = vpop.f32.mrf.mxu1 }
  0x9e   :  { %v146_v51 = vadd.f32 %v145_v50, %v101_v49 }
  0xa0   :  { %v149_v52 = vmax.f32 %v146_v51, 0.0 }
  0xa2   :  { %219 = vmatmul.f32.vlgmr.msra.gmra.mxu3 %v149_v52 }
 0x11d   :  { %v200_v61 = vpop.f32.mrf.mxu2 }
 0x11e   :  { %v201_v62 = vadd.f32 %v291_v60, %v200_v61 }
 0x125   :  { %v220_v63 = vpop.f32.mrf.mxu3 }
 0x126   :  { %v221_v0 = vadd.f32 %v220_v63, %v201_v62 }
 0x128   :  { %v223_v1 = vmax.f32 %v221_v0, 0.0 }
 0x12a   :  { %257 = vmatmul.f32.vlgmr.msra.gmra.mxu0 %v223_v1 }
 0x1a7   :  { %v258_v3 = vpop.f32.mrf.mxu0 }
 0x1a8   :  { %v259_v4 = vadd.f32 %v292_v2, %v258_v3 }
 0x1aa   :  { %261 = vst [vmem:[#allocation11] sm:$0xff] %v259_v4 }
 0x1ab   :  { %272 = dma.vmem_to_hbm [thread:$0]  %s268_s4, 128, %s270_s19, [#allocation4]  }
 0x1ac   :  { %443 = dma.done.wait [#allocation4], 128  }
 0x1ad   :  { %444 = vsyncadd [#allocation4], 4294967168 }
 0x1ae   :  { %277 = vsyncpa [#allocation3], 1 }
 0x1af   :  { %278 = vsyncpa [#allocation6], 1 }
 0x1b0   :  { %279 = vsyncpa [#allocation9], 1 }
 0x1b1   :  { %280 = vsyncpa [#allocation4], 1 }

</bundles_post_ra>
